<compile_context>
chip_gen: v5e
topology: v5e:2x2
jax: 0.10.0
libtpu: 0.0.40
codegen_flags: <defaults>
</compile_context>

<pallas_src>
import functools

import jax
import jax.numpy as jnp
from jax.experimental import pallas as pl
from jax.experimental.pallas import tpu as pltpu


# ------------------------------ fused MHA kernel -----------------------------

def mha_fused_kernel(q_ref, k_ref, v_ref,
                     wq_ref, bq_ref, wk_ref, bk_ref, wv_ref, bv_ref,
                     wo_ref, bo_ref, o_ref, *, heads):
    b, lq, dq = q_ref.shape
    _, lk, dk = k_ref.shape
    _, _, dv = v_ref.shape
    hdq, hdk, hdv = dq // heads, dk // heads, dv // heads

    # ---- projections on (b*L, D): one MXU-direct 2-D matmul each (item #1) ----
    q2 = q_ref[...].reshape(b * lq, dq)
    k2 = k_ref[...].reshape(b * lk, dk)
    v2 = v_ref[...].reshape(b * lk, dv)

    # Weights are pre-transposed to (Din, Dout); wq/bq already carry the
    # 1/sqrt(hdk) score scale (item #3) -> no in-kernel transpose, no per-score scale.
    qp = jnp.dot(q2, wq_ref[...], preferred_element_type=jnp.float32) + bq_ref[...]
    kp = jnp.dot(k2, wk_ref[...], preferred_element_type=jnp.float32) + bk_ref[...]
    vp = jnp.dot(v2, wv_ref[...], preferred_element_type=jnp.float32) + bv_ref[...]

    # ---- per-head attention, batched over the b_tile rows ----
    # TODO(synk): optional attention mask (masked_fill(-inf) + nan_to_num) not
    # wired in; this matches the mask=None path of the reference module.
    head_outs = []
    for h in range(heads):  # statically unrolled; heads is small and static
        qh = qp[:, h * hdq:(h + 1) * hdq].reshape(b, lq, hdq)
        kh = kp[:, h * hdk:(h + 1) * hdk].reshape(b, lk, hdk)
        vh = vp[:, h * hdv:(h + 1) * hdv].reshape(b, lk, hdv)

        # scores = qh @ kh^T, batched over b (scale already folded into qh).
        s = jnp.einsum('bqd,bkd->bqk', qh, kh,
                       preferred_element_type=jnp.float32)        # (b, lq, lk)

        # numerically stable softmax, kept in f32
        m = jnp.max(s, axis=-1, keepdims=True)
        p = jnp.exp(s - m)
        denom = jnp.sum(p, axis=-1, keepdims=True)                 # (b, lq, 1)

        oh = jnp.einsum('bqk,bkd->bqd', p, vh,
                        preferred_element_type=jnp.float32)        # (b, lq, hdv)
        # Fold the normalization onto the small (lq, hdv) tile.  approx=True
        # would use the (free) EUP slot but risks the 1e-4 f32 parity check.
        oh = oh * pl.reciprocal(denom, approx=False)
        head_outs.append(oh.reshape(b * lq, hdv))

    concat = jnp.concatenate(head_outs, axis=-1)                   # (b*lq, dv)

    out = jnp.dot(concat, wo_ref[...],
                  preferred_element_type=jnp.float32) + bo_ref[...]
    o_ref[...] = out.reshape(b, lq, dv).astype(o_ref.dtype)


# ------------------------- parameter init / host-side prep -------------------

def init_mha_params(key, dq, dk, dv, heads):
    """Deterministic init matching nn.Linear shapes (W: (out, in), b: (out,))."""
    for dim in (dq, dk, dv):
        assert dim % heads == 0 and dim // heads > 0
    keys = jax.random.split(key, 8)

    def lin_init(kw, kb, din, dout):
        bound = 1.0 / jnp.sqrt(jnp.float32(din))
        w = jax.random.uniform(kw, (dout, din), jnp.float32, -bound, bound)
        b = jax.random.uniform(kb, (dout,), jnp.float32, -bound, bound)
        return w, b

    wq, bq = lin_init(keys[0], keys[1], dq, dq)
    wk, bk = lin_init(keys[2], keys[3], dk, dk)
    wv, bv = lin_init(keys[4], keys[5], dv, dv)
    wo, bo = lin_init(keys[6], keys[7], dv, dv)
    return dict(wq=wq, bq=bq, wk=wk, bk=bk, wv=wv, bv=bv, wo=wo, bo=bo)


def prepare_mha_params(params, heads):
    """One-time host-side prep (item #9): transpose weights to (Din, Dout),
    reshape biases to (1, D), and fold 1/sqrt(dk_head) into the Q projection
    (item #3). Call once at init, not per forward."""
    dq = params["wq"].shape[0]
    dk = params["wk"].shape[0]
    dv = params["wv"].shape[0]
    scale = 1.0 / jnp.sqrt(jnp.float32(dk // heads))
    return dict(
        wq_t=params["wq"].T * scale, bq=(params["bq"] * scale).reshape(1, dq),
        wk_t=params["wk"].T,         bk=params["bk"].reshape(1, dk),
        wv_t=params["wv"].T,         bv=params["bv"].reshape(1, dv),
        wo_t=params["wo"].T,         bo=params["bo"].reshape(1, dv),
    )


# ------------------------- MultiHeadAttention wrapper ------------------------

def multi_head_attention(prep, q, k, v, heads, b_tile=None):
    """Fused forward pass of MultiHeadAttention (mask=None path)."""
    N, LQ, DQ = q.shape
    _, LK, DK = k.shape
    _, _, DV = v.shape
    assert DQ // heads == DK // heads, "q/k head dims must match"

    if b_tile is None:  # largest batch tile (<=8) dividing N: amortizes step overhead
        b_tile = min(N, 8)
        while N % b_tile:
            b_tile -= 1
    n_tiles = N // b_tile

    kernel = functools.partial(mha_fused_kernel, heads=heads)
    const2d = lambda r, c: pl.BlockSpec((r, c), lambda n: (0, 0))

    return pl.pallas_call(
        kernel,
        out_shape=jax.ShapeDtypeStruct((N, LQ, DV), jnp.float32),
        grid_spec=pl.GridSpec(
            grid=(n_tiles,),
            in_specs=[
                pl.BlockSpec((b_tile, LQ, DQ), lambda n: (n, 0, 0)),   # q tile
                pl.BlockSpec((b_tile, LK, DK), lambda n: (n, 0, 0)),   # k tile
                pl.BlockSpec((b_tile, LK, DV), lambda n: (n, 0, 0)),   # v tile
                const2d(DQ, DQ), const2d(1, DQ),                       # wq^T*s, bq*s
                const2d(DK, DK), const2d(1, DK),                       # wk^T, bk
                const2d(DV, DV), const2d(1, DV),                       # wv^T, bv
                const2d(DV, DV), const2d(1, DV),                       # wo^T, bo
            ],
            out_specs=pl.BlockSpec((b_tile, LQ, DV), lambda n: (n, 0, 0)),
        ),
        compiler_params=pltpu.CompilerParams(
            dimension_semantics=("parallel",),       # batch tiles -> both TCs
            vmem_limit_bytes=32 * 1024 * 1024,       # explicit scoped-VMEM budget
        ),
    )(q, k, v, prep["wq_t"], prep["bq"], prep["wk_t"], prep["bk"],
      prep["wv_t"], prep["bv"], prep["wo_t"], prep["bo"])


# ----------------------------- pure-JAX reference ----------------------------

def mha_reference(params, q, k, v, heads):
    N, LQ, DQ = q.shape
    _, LK, DK = k.shape
    _, _, DV = v.shape
    hdq, hdk, hdv = DQ // heads, DK // heads, DV // heads

    def lin(x, w, b):
        return x @ w.T + b

    qh = lin(q, params["wq"], params["bq"]).reshape(N, LQ, heads, hdq).transpose(0, 2, 1, 3)
    kh = lin(k, params["wk"], params["bk"]).reshape(N, LK, heads, hdk).transpose(0, 2, 1, 3)
    vh = lin(v, params["wv"], params["bv"]).reshape(N, LK, heads, hdv).transpose(0, 2, 1, 3)
    s = jnp.einsum("nhqd,nhkd->nhqk", qh, kh) / jnp.sqrt(jnp.float32(hdk))
    a = jax.nn.softmax(s, axis=-1)
    o = jnp.einsum("nhqk,nhkd->nhqd", a, vh)
    o = o.transpose(0, 2, 1, 3).reshape(N, LQ, DV)
    return lin(o, params["wo"], params["bo"])


# ---------------------------------- main -------------------------------------

if __name__ == "__main__":
    N, LQ, LK = 2, 8, 8
    dq = dk = dv = 32
    heads = 4

    key = jax.random.PRNGKey(0)
    kparam, kq, kk, kv = jax.random.split(key, 4)
    params = init_mha_params(kparam, dq, dk, dv, heads)
    prep = prepare_mha_params(params, heads)   # once, at init time (item #9)

    q = jax.random.normal(kq, (N, LQ, dq), jnp.float32)
    k = jax.random.normal(kk, (N, LK, dk), jnp.float32)
    v = jax.random.normal(kv, (N, LK, dv), jnp.float32)

    out = multi_head_attention(prep, q, k, v, heads)
    out = jax.block_until_ready(out)

    ref = mha_reference(params, q, k, v, heads)
    assert out.shape == (N, LQ, dv)
    assert jnp.allclose(out, ref, atol=1e-4, rtol=1e-4), "mismatch vs reference"

    print("KERNEL_OK")
</pallas_src>

<mosaic_0001>
module attributes {stable_mosaic.version = 11 : i64} {
  func.func @mha_fused_kernel(%arg0: i32, %arg1: memref<2x8x32xf32, #tpu.memory_space<vmem>>, %arg2: memref<2x8x32xf32, #tpu.memory_space<vmem>>, %arg3: memref<2x8x32xf32, #tpu.memory_space<vmem>>, %arg4: memref<32x32xf32, #tpu.memory_space<vmem>>, %arg5: memref<1x32xf32, #tpu.memory_space<vmem>>, %arg6: memref<32x32xf32, #tpu.memory_space<vmem>>, %arg7: memref<1x32xf32, #tpu.memory_space<vmem>>, %arg8: memref<32x32xf32, #tpu.memory_space<vmem>>, %arg9: memref<1x32xf32, #tpu.memory_space<vmem>>, %arg10: memref<32x32xf32, #tpu.memory_space<vmem>>, %arg11: memref<1x32xf32, #tpu.memory_space<vmem>>, %arg12: memref<2x8x32xf32, #tpu.memory_space<vmem>>) attributes {dimension_semantics = [#tpu.dimension_semantics<parallel>], iteration_bounds = array<i64: 1>, scalar_prefetch = 0 : i64, scratch_operands = 0 : i64, tpu.core_type = #tpu.core_type<tc>, window_params = [{transform_indices = @transform_0, window_bounds = array<i64: 2, 8, 32>}, {transform_indices = @transform_1, window_bounds = array<i64: 2, 8, 32>}, {transform_indices = @transform_2, window_bounds = array<i64: 2, 8, 32>}, {pipeline_mode = #tpu.pipeline_mode<synchronous>, transform_indices = @transform_3, window_bounds = array<i64: 32, 32>}, {pipeline_mode = #tpu.pipeline_mode<synchronous>, transform_indices = @transform_4, window_bounds = array<i64: 1, 32>}, {pipeline_mode = #tpu.pipeline_mode<synchronous>, transform_indices = @transform_5, window_bounds = array<i64: 32, 32>}, {pipeline_mode = #tpu.pipeline_mode<synchronous>, transform_indices = @transform_6, window_bounds = array<i64: 1, 32>}, {pipeline_mode = #tpu.pipeline_mode<synchronous>, transform_indices = @transform_7, window_bounds = array<i64: 32, 32>}, {pipeline_mode = #tpu.pipeline_mode<synchronous>, transform_indices = @transform_8, window_bounds = array<i64: 1, 32>}, {pipeline_mode = #tpu.pipeline_mode<synchronous>, transform_indices = @transform_9, window_bounds = array<i64: 32, 32>}, {pipeline_mode = #tpu.pipeline_mode<synchronous>, transform_indices = @transform_10, window_bounds = array<i64: 1, 32>}, {transform_indices = @transform_11, window_bounds = array<i64: 2, 8, 32>}]} {
    %c0 = arith.constant 0 : index
    %c0_0 = arith.constant 0 : index
    %c0_1 = arith.constant 0 : index
    %0 = vector.load %arg1[%c0, %c0_0, %c0_1] : memref<2x8x32xf32, #tpu.memory_space<vmem>>, vector<2x8x32xf32>
    %1 = vector.shape_cast %0 : vector<2x8x32xf32> to vector<16x32xf32>
    %c0_2 = arith.constant 0 : index
    %c0_3 = arith.constant 0 : index
    %c0_4 = arith.constant 0 : index
    %2 = vector.load %arg2[%c0_2, %c0_3, %c0_4] : memref<2x8x32xf32, #tpu.memory_space<vmem>>, vector<2x8x32xf32>
    %3 = vector.shape_cast %2 : vector<2x8x32xf32> to vector<16x32xf32>
    %c0_5 = arith.constant 0 : index
    %c0_6 = arith.constant 0 : index
    %c0_7 = arith.constant 0 : index
    %4 = vector.load %arg3[%c0_5, %c0_6, %c0_7] : memref<2x8x32xf32, #tpu.memory_space<vmem>>, vector<2x8x32xf32>
    %5 = vector.shape_cast %4 : vector<2x8x32xf32> to vector<16x32xf32>
    %c0_8 = arith.constant 0 : index
    %c0_9 = arith.constant 0 : index
    %6 = vector.load %arg4[%c0_8, %c0_9] : memref<32x32xf32, #tpu.memory_space<vmem>>, vector<32x32xf32>
    %cst = arith.constant dense<0.000000e+00> : vector<16x32xf32>
    %7 = tpu.matmul %1, %6, %cst {dimension_numbers = #tpu.dot_dimension_numbers<[1], [0], [0], [1], [0, 0, 1, 1], [], []>} : vector<16x32xf32>, vector<32x32xf32>, vector<16x32xf32> -> vector<16x32xf32>
    %c0_10 = arith.constant 0 : index
    %c0_11 = arith.constant 0 : index
    %8 = vector.load %arg5[%c0_10, %c0_11] : memref<1x32xf32, #tpu.memory_space<vmem>>, vector<1x32xf32>
    %9 = vector.broadcast %8 : vector<1x32xf32> to vector<16x32xf32>
    %10 = arith.addf %7, %9 : vector<16x32xf32>
    %c0_12 = arith.constant 0 : index
    %c0_13 = arith.constant 0 : index
    %11 = vector.load %arg6[%c0_12, %c0_13] : memref<32x32xf32, #tpu.memory_space<vmem>>, vector<32x32xf32>
    %cst_14 = arith.constant dense<0.000000e+00> : vector<16x32xf32>
    %12 = tpu.matmul %3, %11, %cst_14 {dimension_numbers = #tpu.dot_dimension_numbers<[1], [0], [0], [1], [0, 0, 1, 1], [], []>} : vector<16x32xf32>, vector<32x32xf32>, vector<16x32xf32> -> vector<16x32xf32>
    %c0_15 = arith.constant 0 : index
    %c0_16 = arith.constant 0 : index
    %13 = vector.load %arg7[%c0_15, %c0_16] : memref<1x32xf32, #tpu.memory_space<vmem>>, vector<1x32xf32>
    %14 = vector.broadcast %13 : vector<1x32xf32> to vector<16x32xf32>
    %15 = arith.addf %12, %14 : vector<16x32xf32>
    %c0_17 = arith.constant 0 : index
    %c0_18 = arith.constant 0 : index
    %16 = vector.load %arg8[%c0_17, %c0_18] : memref<32x32xf32, #tpu.memory_space<vmem>>, vector<32x32xf32>
    %cst_19 = arith.constant dense<0.000000e+00> : vector<16x32xf32>
    %17 = tpu.matmul %5, %16, %cst_19 {dimension_numbers = #tpu.dot_dimension_numbers<[1], [0], [0], [1], [0, 0, 1, 1], [], []>} : vector<16x32xf32>, vector<32x32xf32>, vector<16x32xf32> -> vector<16x32xf32>
    %c0_20 = arith.constant 0 : index
    %c0_21 = arith.constant 0 : index
    %18 = vector.load %arg9[%c0_20, %c0_21] : memref<1x32xf32, #tpu.memory_space<vmem>>, vector<1x32xf32>
    %19 = vector.broadcast %18 : vector<1x32xf32> to vector<16x32xf32>
    %20 = arith.addf %17, %19 : vector<16x32xf32>
    %21 = vector.extract_strided_slice %10 {offsets = [0, 0], sizes = [16, 8], strides = [1, 1]} : vector<16x32xf32> to vector<16x8xf32>
    %22 = vector.shape_cast %21 : vector<16x8xf32> to vector<2x8x8xf32>
    %23 = vector.extract_strided_slice %15 {offsets = [0, 0], sizes = [16, 8], strides = [1, 1]} : vector<16x32xf32> to vector<16x8xf32>
    %24 = vector.shape_cast %23 : vector<16x8xf32> to vector<2x8x8xf32>
    %25 = vector.extract_strided_slice %20 {offsets = [0, 0], sizes = [16, 8], strides = [1, 1]} : vector<16x32xf32> to vector<16x8xf32>
    %26 = vector.shape_cast %25 : vector<16x8xf32> to vector<2x8x8xf32>
    "tpu.trace_start"() <{level = 10 : i32, message = "bqd,bkd->bqk"}> : () -> ()
    %cst_22 = arith.constant dense<0.000000e+00> : vector<2x8x8xf32>
    %27 = tpu.matmul %22, %24, %cst_22 {dimension_numbers = #tpu.dot_dimension_numbers<[2], [2], [1], [1], [0, 0, 0, 1, 1, 1], [0], [0]>} : vector<2x8x8xf32>, vector<2x8x8xf32>, vector<2x8x8xf32> -> vector<2x8x8xf32>
    "tpu.trace_stop"() : () -> ()
    %cst_23 = arith.constant dense<0xFF800000> : vector<2x8xf32>
    %28 = vector.multi_reduction <maximumf>, %27, %cst_23 [2] : vector<2x8x8xf32> to vector<2x8xf32>
    %29 = vector.shape_cast %28 : vector<2x8xf32> to vector<2x8x1xf32>
    %30 = vector.broadcast %29 : vector<2x8x1xf32> to vector<2x8x8xf32>
    %31 = arith.subf %27, %30 : vector<2x8x8xf32>
    %32 = math.exp %31 : vector<2x8x8xf32>
    %cst_24 = arith.constant dense<0.000000e+00> : vector<2x8xf32>
    %33 = vector.multi_reduction <add>, %32, %cst_24 [2] : vector<2x8x8xf32> to vector<2x8xf32>
    %34 = vector.shape_cast %33 : vector<2x8xf32> to vector<2x8x1xf32>
    "tpu.trace_start"() <{level = 10 : i32, message = "bqk,bkd->bqd"}> : () -> ()
    %cst_25 = arith.constant dense<0.000000e+00> : vector<2x8x8xf32>
    %35 = tpu.matmul %32, %26, %cst_25 {dimension_numbers = #tpu.dot_dimension_numbers<[2], [1], [1], [2], [0, 0, 0, 1, 1, 2], [0], [0]>} : vector<2x8x8xf32>, vector<2x8x8xf32>, vector<2x8x8xf32> -> vector<2x8x8xf32>
    "tpu.trace_stop"() : () -> ()
    %36 = tpu.reciprocal %34 : vector<2x8x1xf32> -> vector<2x8x1xf32>
    %37 = vector.broadcast %36 : vector<2x8x1xf32> to vector<2x8x8xf32>
    %38 = arith.mulf %35, %37 : vector<2x8x8xf32>
    %39 = vector.shape_cast %38 : vector<2x8x8xf32> to vector<16x8xf32>
    %40 = vector.extract_strided_slice %10 {offsets = [0, 8], sizes = [16, 8], strides = [1, 1]} : vector<16x32xf32> to vector<16x8xf32>
    %41 = vector.shape_cast %40 : vector<16x8xf32> to vector<2x8x8xf32>
    %42 = vector.extract_strided_slice %15 {offsets = [0, 8], sizes = [16, 8], strides = [1, 1]} : vector<16x32xf32> to vector<16x8xf32>
    %43 = vector.shape_cast %42 : vector<16x8xf32> to vector<2x8x8xf32>
    %44 = vector.extract_strided_slice %20 {offsets = [0, 8], sizes = [16, 8], strides = [1, 1]} : vector<16x32xf32> to vector<16x8xf32>
    %45 = vector.shape_cast %44 : vector<16x8xf32> to vector<2x8x8xf32>
    "tpu.trace_start"() <{level = 10 : i32, message = "bqd,bkd->bqk"}> : () -> ()
    %cst_26 = arith.constant dense<0.000000e+00> : vector<2x8x8xf32>
    %46 = tpu.matmul %41, %43, %cst_26 {dimension_numbers = #tpu.dot_dimension_numbers<[2], [2], [1], [1], [0, 0, 0, 1, 1, 1], [0], [0]>} : vector<2x8x8xf32>, vector<2x8x8xf32>, vector<2x8x8xf32> -> vector<2x8x8xf32>
    "tpu.trace_stop"() : () -> ()
    %cst_27 = arith.constant dense<0xFF800000> : vector<2x8xf32>
    %47 = vector.multi_reduction <maximumf>, %46, %cst_27 [2] : vector<2x8x8xf32> to vector<2x8xf32>
    %48 = vector.shape_cast %47 : vector<2x8xf32> to vector<2x8x1xf32>
    %49 = vector.broadcast %48 : vector<2x8x1xf32> to vector<2x8x8xf32>
    %50 = arith.subf %46, %49 : vector<2x8x8xf32>
    %51 = math.exp %50 : vector<2x8x8xf32>
    %cst_28 = arith.constant dense<0.000000e+00> : vector<2x8xf32>
    %52 = vector.multi_reduction <add>, %51, %cst_28 [2] : vector<2x8x8xf32> to vector<2x8xf32>
    %53 = vector.shape_cast %52 : vector<2x8xf32> to vector<2x8x1xf32>
    "tpu.trace_start"() <{level = 10 : i32, message = "bqk,bkd->bqd"}> : () -> ()
    %cst_29 = arith.constant dense<0.000000e+00> : vector<2x8x8xf32>
    %54 = tpu.matmul %51, %45, %cst_29 {dimension_numbers = #tpu.dot_dimension_numbers<[2], [1], [1], [2], [0, 0, 0, 1, 1, 2], [0], [0]>} : vector<2x8x8xf32>, vector<2x8x8xf32>, vector<2x8x8xf32> -> vector<2x8x8xf32>
    "tpu.trace_stop"() : () -> ()
    %55 = tpu.reciprocal %53 : vector<2x8x1xf32> -> vector<2x8x1xf32>
    %56 = vector.broadcast %55 : vector<2x8x1xf32> to vector<2x8x8xf32>
    %57 = arith.mulf %54, %56 : vector<2x8x8xf32>
    %58 = vector.shape_cast %57 : vector<2x8x8xf32> to vector<16x8xf32>
    %59 = vector.extract_strided_slice %10 {offsets = [0, 16], sizes = [16, 8], strides = [1, 1]} : vector<16x32xf32> to vector<16x8xf32>
    %60 = vector.shape_cast %59 : vector<16x8xf32> to vector<2x8x8xf32>
    %61 = vector.extract_strided_slice %15 {offsets = [0, 16], sizes = [16, 8], strides = [1, 1]} : vector<16x32xf32> to vector<16x8xf32>
    %62 = vector.shape_cast %61 : vector<16x8xf32> to vector<2x8x8xf32>
    %63 = vector.extract_strided_slice %20 {offsets = [0, 16], sizes = [16, 8], strides = [1, 1]} : vector<16x32xf32> to vector<16x8xf32>
    %64 = vector.shape_cast %63 : vector<16x8xf32> to vector<2x8x8xf32>
    "tpu.trace_start"() <{level = 10 : i32, message = "bqd,bkd->bqk"}> : () -> ()
    %cst_30 = arith.constant dense<0.000000e+00> : vector<2x8x8xf32>
    %65 = tpu.matmul %60, %62, %cst_30 {dimension_numbers = #tpu.dot_dimension_numbers<[2], [2], [1], [1], [0, 0, 0, 1, 1, 1], [0], [0]>} : vector<2x8x8xf32>, vector<2x8x8xf32>, vector<2x8x8xf32> -> vector<2x8x8xf32>
    "tpu.trace_stop"() : () -> ()
    %cst_31 = arith.constant dense<0xFF800000> : vector<2x8xf32>
    %66 = vector.multi_reduction <maximumf>, %65, %cst_31 [2] : vector<2x8x8xf32> to vector<2x8xf32>
    %67 = vector.shape_cast %66 : vector<2x8xf32> to vector<2x8x1xf32>
    %68 = vector.broadcast %67 : vector<2x8x1xf32> to vector<2x8x8xf32>
    %69 = arith.subf %65, %68 : vector<2x8x8xf32>
    %70 = math.exp %69 : vector<2x8x8xf32>
    %cst_32 = arith.constant dense<0.000000e+00> : vector<2x8xf32>
    %71 = vector.multi_reduction <add>, %70, %cst_32 [2] : vector<2x8x8xf32> to vector<2x8xf32>
    %72 = vector.shape_cast %71 : vector<2x8xf32> to vector<2x8x1xf32>
    "tpu.trace_start"() <{level = 10 : i32, message = "bqk,bkd->bqd"}> : () -> ()
    %cst_33 = arith.constant dense<0.000000e+00> : vector<2x8x8xf32>
    %73 = tpu.matmul %70, %64, %cst_33 {dimension_numbers = #tpu.dot_dimension_numbers<[2], [1], [1], [2], [0, 0, 0, 1, 1, 2], [0], [0]>} : vector<2x8x8xf32>, vector<2x8x8xf32>, vector<2x8x8xf32> -> vector<2x8x8xf32>
    "tpu.trace_stop"() : () -> ()
    %74 = tpu.reciprocal %72 : vector<2x8x1xf32> -> vector<2x8x1xf32>
    %75 = vector.broadcast %74 : vector<2x8x1xf32> to vector<2x8x8xf32>
    %76 = arith.mulf %73, %75 : vector<2x8x8xf32>
    %77 = vector.shape_cast %76 : vector<2x8x8xf32> to vector<16x8xf32>
    %78 = vector.extract_strided_slice %10 {offsets = [0, 24], sizes = [16, 8], strides = [1, 1]} : vector<16x32xf32> to vector<16x8xf32>
    %79 = vector.shape_cast %78 : vector<16x8xf32> to vector<2x8x8xf32>
    %80 = vector.extract_strided_slice %15 {offsets = [0, 24], sizes = [16, 8], strides = [1, 1]} : vector<16x32xf32> to vector<16x8xf32>
    %81 = vector.shape_cast %80 : vector<16x8xf32> to vector<2x8x8xf32>
    %82 = vector.extract_strided_slice %20 {offsets = [0, 24], sizes = [16, 8], strides = [1, 1]} : vector<16x32xf32> to vector<16x8xf32>
    %83 = vector.shape_cast %82 : vector<16x8xf32> to vector<2x8x8xf32>
    "tpu.trace_start"() <{level = 10 : i32, message = "bqd,bkd->bqk"}> : () -> ()
    %cst_34 = arith.constant dense<0.000000e+00> : vector<2x8x8xf32>
    %84 = tpu.matmul %79, %81, %cst_34 {dimension_numbers = #tpu.dot_dimension_numbers<[2], [2], [1], [1], [0, 0, 0, 1, 1, 1], [0], [0]>} : vector<2x8x8xf32>, vector<2x8x8xf32>, vector<2x8x8xf32> -> vector<2x8x8xf32>
    "tpu.trace_stop"() : () -> ()
    %cst_35 = arith.constant dense<0xFF800000> : vector<2x8xf32>
    %85 = vector.multi_reduction <maximumf>, %84, %cst_35 [2] : vector<2x8x8xf32> to vector<2x8xf32>
    %86 = vector.shape_cast %85 : vector<2x8xf32> to vector<2x8x1xf32>
    %87 = vector.broadcast %86 : vector<2x8x1xf32> to vector<2x8x8xf32>
    %88 = arith.subf %84, %87 : vector<2x8x8xf32>
    %89 = math.exp %88 : vector<2x8x8xf32>
    %cst_36 = arith.constant dense<0.000000e+00> : vector<2x8xf32>
    %90 = vector.multi_reduction <add>, %89, %cst_36 [2] : vector<2x8x8xf32> to vector<2x8xf32>
    %91 = vector.shape_cast %90 : vector<2x8xf32> to vector<2x8x1xf32>
    "tpu.trace_start"() <{level = 10 : i32, message = "bqk,bkd->bqd"}> : () -> ()
    %cst_37 = arith.constant dense<0.000000e+00> : vector<2x8x8xf32>
    %92 = tpu.matmul %89, %83, %cst_37 {dimension_numbers = #tpu.dot_dimension_numbers<[2], [1], [1], [2], [0, 0, 0, 1, 1, 2], [0], [0]>} : vector<2x8x8xf32>, vector<2x8x8xf32>, vector<2x8x8xf32> -> vector<2x8x8xf32>
    "tpu.trace_stop"() : () -> ()
    %93 = tpu.reciprocal %91 : vector<2x8x1xf32> -> vector<2x8x1xf32>
    %94 = vector.broadcast %93 : vector<2x8x1xf32> to vector<2x8x8xf32>
    %95 = arith.mulf %92, %94 : vector<2x8x8xf32>
    %96 = vector.shape_cast %95 : vector<2x8x8xf32> to vector<16x8xf32>
    %97 = tpu.concatenate %39, %58, %77, %96 in 1 : vector<16x8xf32>, vector<16x8xf32>, vector<16x8xf32>, vector<16x8xf32> -> vector<16x32xf32>
    %c0_38 = arith.constant 0 : index
    %c0_39 = arith.constant 0 : index
    %98 = vector.load %arg10[%c0_38, %c0_39] : memref<32x32xf32, #tpu.memory_space<vmem>>, vector<32x32xf32>
    %cst_40 = arith.constant dense<0.000000e+00> : vector<16x32xf32>
    %99 = tpu.matmul %97, %98, %cst_40 {dimension_numbers = #tpu.dot_dimension_numbers<[1], [0], [0], [1], [0, 0, 1, 1], [], []>} : vector<16x32xf32>, vector<32x32xf32>, vector<16x32xf32> -> vector<16x32xf32>
    %c0_41 = arith.constant 0 : index
    %c0_42 = arith.constant 0 : index
    %100 = vector.load %arg11[%c0_41, %c0_42] : memref<1x32xf32, #tpu.memory_space<vmem>>, vector<1x32xf32>
    %101 = vector.broadcast %100 : vector<1x32xf32> to vector<16x32xf32>
    %102 = arith.addf %99, %101 : vector<16x32xf32>
    %103 = vector.shape_cast %102 : vector<16x32xf32> to vector<2x8x32xf32>
    %c0_43 = arith.constant 0 : index
    %c0_44 = arith.constant 0 : index
    %c0_45 = arith.constant 0 : index
    %104 = vector.load %arg12[%c0_43, %c0_44, %c0_45] : memref<2x8x32xf32, #tpu.memory_space<vmem>>, vector<2x8x32xf32>
    tpu.vector_store %arg12[%c0_43, %c0_44, %c0_45], %103 {strides = array<i32>} : memref<2x8x32xf32, #tpu.memory_space<vmem>>, vector<2x8x32xf32>,
    return
  }
  func.func @transform_0(%arg0: i32) -> (i32, i32, i32) {
    %c0_i32 = arith.constant 0 : i32
    %c0_i32_0 = arith.constant 0 : i32
    %c0_i32_1 = arith.constant 0 : i32
    return %arg0, %c0_i32, %c0_i32_0 : i32, i32, i32
  }
  func.func @transform_1(%arg0: i32) -> (i32, i32, i32) {
    %c0_i32 = arith.constant 0 : i32
    %c0_i32_0 = arith.constant 0 : i32
    %c0_i32_1 = arith.constant 0 : i32
    return %arg0, %c0_i32, %c0_i32_0 : i32, i32, i32
  }
  func.func @transform_2(%arg0: i32) -> (i32, i32, i32) {
    %c0_i32 = arith.constant 0 : i32
    %c0_i32_0 = arith.constant 0 : i32
    %c0_i32_1 = arith.constant 0 : i32
    return %arg0, %c0_i32, %c0_i32_0 : i32, i32, i32
  }
  func.func @transform_3(%arg0: i32) -> (i32, i32) {
    %c0_i32 = arith.constant 0 : i32
    %c0_i32_0 = arith.constant 0 : i32
    %c0_i32_1 = arith.constant 0 : i32
    return %c0_i32, %c0_i32_0 : i32, i32
  }
  func.func @transform_4(%arg0: i32) -> (i32, i32) {
    %c0_i32 = arith.constant 0 : i32
    %c0_i32_0 = arith.constant 0 : i32
    %c0_i32_1 = arith.constant 0 : i32
    return %c0_i32, %c0_i32_0 : i32, i32
  }
  func.func @transform_5(%arg0: i32) -> (i32, i32) {
    %c0_i32 = arith.constant 0 : i32
    %c0_i32_0 = arith.constant 0 : i32
    %c0_i32_1 = arith.constant 0 : i32
    return %c0_i32, %c0_i32_0 : i32, i32
  }
  func.func @transform_6(%arg0: i32) -> (i32, i32) {
    %c0_i32 = arith.constant 0 : i32
    %c0_i32_0 = arith.constant 0 : i32
    %c0_i32_1 = arith.constant 0 : i32
    return %c0_i32, %c0_i32_0 : i32, i32
  }
  func.func @transform_7(%arg0: i32) -> (i32, i32) {
    %c0_i32 = arith.constant 0 : i32
    %c0_i32_0 = arith.constant 0 : i32
    %c0_i32_1 = arith.constant 0 : i32
    return %c0_i32, %c0_i32_0 : i32, i32
  }
  func.func @transform_8(%arg0: i32) -> (i32, i32) {
    %c0_i32 = arith.constant 0 : i32
    %c0_i32_0 = arith.constant 0 : i32
    %c0_i32_1 = arith.constant 0 : i32
    return %c0_i32, %c0_i32_0 : i32, i32
  }
  func.func @transform_9(%arg0: i32) -> (i32, i32) {
    %c0_i32 = arith.constant 0 : i32
    %c0_i32_0 = arith.constant 0 : i32
    %c0_i32_1 = arith.constant 0 : i32
    return %c0_i32, %c0_i32_0 : i32, i32
  }
  func.func @transform_10(%arg0: i32) -> (i32, i32) {
    %c0_i32 = arith.constant 0 : i32
    %c0_i32_0 = arith.constant 0 : i32
    %c0_i32_1 = arith.constant 0 : i32
    return %c0_i32, %c0_i32_0 : i32, i32
  }
  func.func @transform_11(%arg0: i32) -> (i32, i32, i32) {
    %c0_i32 = arith.constant 0 : i32
    %c0_i32_0 = arith.constant 0 : i32
    %c0_i32_1 = arith.constant 0 : i32
    return %arg0, %c0_i32, %c0_i32_0 : i32, i32, i32
  }
}

</mosaic_0001>

<bundles_post_ra>
// kernel: tpu_custom_call.1
= control target key start
LH: loop header
LB: loop body
LE: loop exit
PB: predicated region body
PF: predicated region fallthrough
CT: control target
= control target key end

     0   :  { %16 = vsyncpa [#allocation3], 0  ;;  %s1520_s0 = inlined_call_operand.hbm [shape: f32[2,8,32], index: 0, kind: input, shape index: {}]   ;;  %s1521_s1 = inlined_call_operand.hbm [shape: f32[2,8,32], index: 1, kind: input, shape index: {}]   ;;  %s1522_s2 = inlined_call_operand.hbm [shape: f32[2,8,32], index: 2, kind: input, shape index: {}]   ;;  %s1523_s3 = inlined_call_operand.hbm [shape: f32[32,32], index: 3, kind: input, shape index: {}]   ;;  %s1524_s4 = inlined_call_operand.vmem [shape: f32[1,32], index: 4, kind: input, shape index: {}]   ;;  %s1525_s5 = inlined_call_operand.hbm [shape: f32[32,32], index: 5, kind: input, shape index: {}]   ;;  %s1526_s6 = inlined_call_operand.vmem [shape: f32[1,32], index: 6, kind: input, shape index: {}]   ;;  %s1527_s7 = inlined_call_operand.hbm [shape: f32[32,32], index: 7, kind: input, shape index: {}]   ;;  %s1528_s8 = inlined_call_operand.vmem [shape: f32[1,32], index: 8, kind: input, shape index: {}]   ;;  %s1529_s9 = inlined_call_operand.hbm [shape: f32[32,32], index: 9, kind: input, shape index: {}]   ;;  %s1530_s10 = inlined_call_operand.vmem [shape: f32[1,32], index: 10, kind: input, shape index: {}]   ;;  %s1531_s11 = inlined_call_operand.hbm [shape: f32[2,8,32], index: 11, kind: output, shape index: {}]  }
   0x1   :  { %17 = vsyncpa [#allocation6], 0 }
   0x2   :  { %18 = vsyncpa [#allocation9], 0 }
   0x3   :  { %19 = vsyncpa [#allocation12], 0 }
   0x4   :  { %20 = vsyncpa [#allocation4], 0  ;;  %s38_s19 = sshll.u32 %s1521_s1, 4  ;;  %s1270_s20 = smov [#allocation5]   ;;  %s39_s19 = int_to_ptr.hbm [resolvable:$true] %s38_s19 }
   0x5   :  { %s40_s21 = sshll.u32 %s1270_s20, 4  ;;  %s64_s24 = sshll.u32 %s1523_s3, 4  ;;  %s41_s21 = int_to_ptr.vmem [resolvable:$true] %s40_s21  ;;  %s65_s24 = int_to_ptr.hbm [resolvable:$true] %s64_s24 }
   0x6   :  { %s1271_s25 = smov 128   ;;  %s1272_s26 = smov 8  }
   0x7   :  { %46 = dma.hbm_to_vmem [thread:$0]  %s39_s19, 256, %s41_s21, [#allocation6], %s1271_s25, %s1271_s25, %s1272_s26  }
   0x8   :  { %s1273_s27 = smov [#allocation8]   ;;  %s94_s1 = sshll.u32 %s1527_s7, 4  ;;  %s95_s1 = int_to_ptr.hbm [resolvable:$true] %s94_s1 }
   0x9   :  { %s66_s28 = sshll.u32 %s1273_s27, 4  ;;  %s25_s13 = sshll.u32 %s1520_s0, 4  ;;  %s67_s28 = int_to_ptr.vmem [resolvable:$true] %s66_s28  ;;  %s26_s13 = int_to_ptr.hbm [resolvable:$true] %s25_s13 }
   0xa   :  { %72 = dma.hbm_to_vmem [thread:$0]  %s65_s24, 512, %s67_s28, [#allocation9], %s1271_s25, %s1271_s25, %s1272_s26  }
   0xb   :  { %s1274_s14 = smov [#allocation11]   ;;  %s1275_s16 = smov [#allocation2]  }
   0xc   :  { %s96_s15 = sshll.u32 %s1274_s14, 4  ;;  %s27_s7 = sshll.u32 %s1275_s16, 4  ;;  %s97_s15 = int_to_ptr.vmem [resolvable:$true] %s96_s15  ;;  %s28_s7 = int_to_ptr.vmem [resolvable:$true] %s27_s7 }
   0xd   :  { %102 = dma.hbm_to_vmem [thread:$0]  %s95_s1, 512, %s97_s15, [#allocation12], %s1271_s25, %s1271_s25, %s1272_s26  }
   0xe   :  { %s51_s19 = sshll.u32 %s1522_s2, 4  ;;  %s79_s21 = sshll.u32 %s1525_s5, 4  ;;  %s52_s19 = int_to_ptr.hbm [resolvable:$true] %s51_s19  ;;  %s80_s21 = int_to_ptr.hbm [resolvable:$true] %s79_s21 }
   0xf   :  { %33 = dma.hbm_to_vmem [thread:$0]  %s26_s13, 256, %s28_s7, [#allocation3], %s1271_s25, %s1271_s25, %s1272_s26  }
  0x10   :  { %s1276_s22 = smov [#allocation7]   ;;  %s1277_s24 = smov [#allocation10]  }
  0x11   :  { %s53_s23 = sshll.u32 %s1276_s22, 4  ;;  %s81_s2 = sshll.u32 %s1277_s24, 4  ;;  %s54_s23 = int_to_ptr.vmem [resolvable:$true] %s53_s23  ;;  %s82_s2 = int_to_ptr.vmem [resolvable:$true] %s81_s2 }
  0x12   :  { %59 = dma.hbm_to_vmem [thread:$0]  %s52_s19, 256, %s54_s23, [#allocation6], %s1271_s25, %s1271_s25, %s1272_s26  }
  0x13   :  { %s109_s29 = sshll.u32 %s1529_s9, 4  ;;  %s1278_s5 = smov [#allocation13]   ;;  %s110_s29 = int_to_ptr.hbm [resolvable:$true] %s109_s29 }
  0x14   :  { %87 = dma.hbm_to_vmem [thread:$0]  %s80_s21, 512, %s82_s2, [#allocation9], %s1271_s25, %s1271_s25, %s1272_s26  }
  0x15   :  { %s111_s30 = sshll.u32 %s1278_s5, 4  ;;  %s112_s30 = int_to_ptr.vmem [resolvable:$true] %s111_s30 }
  0x16   :  { %117 = dma.hbm_to_vmem [thread:$0]  %s110_s29, 512, %s112_s30, [#allocation12], %s1271_s25, %s1271_s25, %s1272_s26  }
  0x17   :  { %1260 = dma.done.wait [#allocation3], 256  }
  0x18   :  { %1261 = vsyncadd [#allocation3], 4294967040 }
  0x19   :  { %1262 = dma.done.wait [#allocation6], 512  }
  0x1a   :  { %1263 = vsyncadd [#allocation6], 4294966784 }
  0x1b   :  { %1264 = dma.done.wait [#allocation9], 1024  }
  0x1c   :  { %1265 = vsyncadd [#allocation9], 4294966272 }
  0x1d   :  { %1266 = dma.done.wait [#allocation12], 1024  }
  0x1e   :  { %1267 = vsyncadd [#allocation12], 4294966272  ;;  %v195_v0 = vld [vmem:[#allocation10 + $0x18] sm:$0xff]  ;;  %v194_v1 = vld [vmem:[#allocation10 + $0x10] sm:$0xff]  ;;  %vm162_vm0 = vcmask 261120   ;;  %vm266_vm1 = vcmask 64512  }
  0x1f   :  { %v157_v2 = vld [vmem:[#allocation8 + $0x18] sm:$0xff]  ;;  %218 = vmatpush.msra.mxu1 %v195_v0  ;;  %1008 = vmatpush.msra.mxu2 %v195_v0  ;;  %v156_v3 = vld [vmem:[#allocation8 + $0x10] sm:$0xff]  ;;  %v193_v4 = vld [vmem:[#allocation10 + $0x8] sm:$0xff]  ;;  %s1279_s13 = smov 112   ;;  %s1280_s14 = smov 120  }
  0x20   :  { %181 = vmatpush.msra.mxu0 %v157_v2  ;;  %v155_v5 = vld [vmem:[#allocation8 + $0x8] sm:$0xff]  ;;  %v192_v6 = vld [vmem:[#allocation10] sm:$0xff]  ;;  %v148_v10 = vld [vmem:[#allocation2] sm:$0xff]  ;;  %s1281_s15 = smov 104   ;;  %s1283_s16 = smov 24  }
  0x21   :  { %219 = vmatpush.msra.mxu1 %v194_v1  ;;  %1009 = vmatpush.msra.mxu2 %v194_v1  ;;  %v150_v7 = vld [vmem:[#allocation5] sm:$0xff]  ;;  %v151_v9 = vld [vmem:[#allocation5 + $0x8] sm:$0xff]  ;;  %v232_v11 = vld [vmem:[#allocation11 + $0x18] sm:$0xff]  ;;  %s1284_s18 = smov [#allocation14]   ;;  %s960_s21 = sshll.u32 %s1531_s11, 4  ;;  %s961_s21 = int_to_ptr.hbm [resolvable:$true] %s960_s21 }
  0x22   :  { %182 = vmatpush.msra.mxu0 %v156_v3  ;;  %v154_v8 = vld [vmem:[#allocation8] sm:$0xff]  ;;  %v231_v12 = vld [vmem:[#allocation11 + $0x10] sm:$0xff]  ;;  %v230_v13 = vld [vmem:[#allocation11 + $0x8] sm:$0xff]  ;;  %s958_s19 = sshll.u32 %s1284_s18, 4  ;;  %s959_s19 = int_to_ptr.vmem [resolvable:$true] %s958_s19 }
  0x23   :  { %220 = vmatpush.msra.mxu1 %v193_v4  ;;  %1010 = vmatpush.msra.mxu2 %v193_v4  ;;  %v229_v14 = vld [vmem:[#allocation11] sm:$0xff]  ;;  %v149_v15 = vld [vmem:[#allocation2 + $0x8] sm:$0xff]  ;;  %v152_v16 = vld [vmem:[#allocation7] sm:$0xff] }
  0x24   :  { %183 = vmatpush.msra.mxu0 %v155_v5  ;;  %v153_v17 = vld [vmem:[#allocation7 + $0x8] sm:$0xff]  ;;  %v1032_v18 = vld [vmem:[%s1526_s6] ss:$0 sm:$0xff] }
  0x25   :  { %221 = vmatpush.msra.mxu1 %v192_v6  ;;  %1011 = vmatpush.msra.mxu2 %v192_v6  ;;  %v1033_v19 = vld [vmem:[%s1524_s4] ss:$0 sm:$0xff] }
  0x26   :  { %978 = vmatmul.msk.f32.vlgmr.msra.gmra.mxu1 %vm162_vm0, %v150_v7  ;;  %184 = vmatpush.msra.mxu0 %v154_v8  ;;  %v1034_v28 = vld [vmem:[%s1528_s8] ss:$0 sm:$0xff]  ;;  %s1282_s8 = smov 16  }
  0x27   :  { %979 = vmatmul.msk.f32.vlgmr.msra.gmra.mxu2 %vm162_vm0, %v151_v9  ;;  %976 = vmatmul.msk.f32.vlgmr.msra.gmra.mxu0 %vm162_vm0, %v148_v10 }
  0x28   :  { %255 = vmatpush.msrb.mxu2 %v232_v11 }
  0x2a   :  { %256 = vmatpush.msrb.mxu2 %v231_v12 }
  0x2c   :  { %257 = vmatpush.msrb.mxu2 %v230_v13 }
  0x2e   :  { %258 = vmatpush.msrb.mxu2 %v229_v14 }
  0x2f   :  { %977 = vmatmul.msk.f32.gmra.mxu0 %vm162_vm0, %v149_v15  ;;  %980 = vmatmul.msk.f32.vlgmr.msrb.gmra.mxu2 %vm162_vm0, %v152_v16 }
  0x37   :  { %981 = vmatmul.msk.f32.gmra.mxu2 %vm162_vm0, %v153_v17 }
  0xa3   :  { %v223_v20 = vpop.f32.mrf.mxu1 }
  0xa4   :  { %v224_v21 = vadd.f32 %v1032_v18, %v223_v20  ;;  %v186_v22 = vpop.f32.mrf.mxu0 }
  0xa5   :  { %v187_v23 = vadd.f32 %v1033_v19, %v186_v22 }
  0xa6   :  { %573 = vrot.lane.b32.xlu1 %v224_v21, %s1279_s13  ;;  %415 = vrot.lane.b32.xlu0 %v224_v21, %s1280_s14 }
  0xa7   :  { %982 = vmatpush.xpose.msk.msra.mxu3 %vm266_vm1, %v224_v21  ;;  %571 = vrot.lane.b32.xlu2 %v187_v23, %s1279_s13 }
  0xaa   :  { %983 = vmatmul.msk.f32.vlgmr.msra.gmra.mxu3 %vm266_vm1, %v187_v23  ;;  %v226_v24 = vpop.f32.mrf.mxu2 }
  0xab   :  { %v227_v25 = vadd.f32 %v1032_v18, %v226_v24 }
  0xac   :  { %v189_v26 = vpop.f32.mrf.mxu0 }
  0xad   :  { %v190_v27 = vadd.f32 %v1033_v19, %v189_v26  ;;  %984 = vmatpush.xpose.msk.msrb.mxu3 %vm266_vm1, %v227_v25 }
  0xae   :  { %443 = vrot.lane.b32.xlu1 %v227_v25, %s1280_s14  ;;  %413 = vrot.lane.b32.xlu0 %v187_v23, %s1280_s14 }
  0xaf   :  { %441 = vrot.lane.b32.xlu2 %v190_v27, %s1280_s14 }
  0xb2   :  { %985 = vmatmul.msk.f32.vlgmr.msrb.gmra.mxu3 %vm266_vm1, %v190_v27  ;;  %v260_v29 = vpop.f32.mrf.mxu2 }
  0xb3   :  { %v1408_v30 = vadd.f32 %v1034_v28, %v260_v29 }
  0xb5   :  { %355 = vmatpush.msra.mxu3 %v1408_v30 }
  0xb6   :  { %729 = vrot.lane.b32.xlu1 %v224_v21, %s1281_s15  ;;  %601 = vrot.lane.b32.xlu0 %v227_v25, %s1279_s13 }
  0xb7   :  { %599 = vrot.lane.b32.xlu2 %v190_v27, %s1279_s13 }
  0xba   :  { %v263_v31 = vpop.f32.mrf.mxu2 }
  0xbb   :  { %v1414_v32 = vadd.f32 %v1034_v28, %v263_v31 }
  0xbd   :  { %378 = vmatpush.msrb.mxu0 %v1414_v32  ;;  %v1027_v33 = vpack.i.bf16 %v1414_v32, %v1408_v30 }
  0xbe   :  { %757 = vrot.lane.b32.xlu1 %v227_v25, %s1281_s15  ;;  %727 = vrot.lane.b32.xlu0 %v187_v23, %s1281_s15 }
  0xbf   :  { %755 = vrot.lane.b32.xlu2 %v190_v27, %s1281_s15 }
  0xc6   :  { %1028 = vrot.lane.b32.xlu0 %v1027_v33, %s1280_s14 }
 0x101   :  { %v572_v34 = vpop.permute.xlu2 %571 }
 0x109   :  { %v442_v37 = vpop.permute.xlu2 %441 }
 0x111   :  { %v600_v42 = vpop.permute.xlu2 %599 }
 0x118   :  { %v574_v35 = vpop.permute.xlu1 %573  ;;  %v416_v36 = vpop.permute.xlu0 %415 }
 0x119   :  { %988 = vmatpush.xpose.msk.msrb.mxu1 %vm266_vm1, %v416_v36  ;;  %v756_v47 = vpop.permute.xlu2 %755 }
 0x11d   :  { %994 = vmatpush.xpose.msk.msra.mxu1 %vm266_vm1, %v574_v35 }
 0x120   :  { %v444_v38 = vpop.permute.xlu1 %443  ;;  %v414_v39 = vpop.permute.xlu0 %413 }
 0x121   :  { %990 = vmatpush.xpose.msk.msra.mxu2 %vm266_vm1, %v444_v38  ;;  %989 = vmatmul.msk.f32.vlgmr.msrb.gmra.mxu1 %vm266_vm1, %v414_v39 }
 0x124   :  { %991 = vmatmul.msk.f32.vlgmr.msra.gmra.mxu2 %vm266_vm1, %v442_v37 }
 0x128   :  { %v730_v40 = vpop.permute.xlu1 %729  ;;  %v602_v41 = vpop.permute.xlu0 %601 }
 0x129   :  { %995 = vmatmul.msk.f32.vlgmr.msra.gmra.mxu1 %vm266_vm1, %v572_v34  ;;  %996 = vmatpush.xpose.msk.msrb.mxu2 %vm266_vm1, %v602_v41 }
 0x12a   :  { %1000 = vmatpush.xpose.msk.msrb.mxu1 %vm266_vm1, %v730_v40 }
 0x12c   :  { %997 = vmatmul.msk.f32.vlgmr.msrb.gmra.mxu2 %vm266_vm1, %v600_v42 }
 0x12d   :  { %v290_v43 = vpop.f32.mrf.mxu3 }
 0x12e   :  { %v319_v44 = vsel %vm266_vm1, %v290_v43, -inf }
 0x12f   :  { %320 = vmax.xlane.f32.xlu0 %v319_v44 }
 0x130   :  { %v758_v45 = vpop.permute.xlu1 %757  ;;  %v728_v46 = vpop.permute.xlu0 %727 }
 0x131   :  { %1001 = vmatmul.msk.f32.vlgmr.msrb.gmra.mxu1 %vm266_vm1, %v728_v46  ;;  %1002 = vmatpush.xpose.msk.msra.mxu2 %vm266_vm1, %v758_v45 }
 0x134   :  { %1003 = vmatmul.msk.f32.vlgmr.msra.gmra.mxu2 %vm266_vm1, %v756_v47 }
 0x135   :  { %v316_v48 = vpop.f32.mrf.mxu3 }
 0x136   :  { %v322_v49 = vsel %vm266_vm1, %v316_v48, -inf }
 0x137   :  { %323 = vmax.xlane.f32.xlu2 %v322_v49 }
 0x138   :  { %v1029_v50 = vpop.permute.xlu0 %1028 }
 0x139   :  { %v1031_v51 = vunpack.i.h.bf16 %v1029_v50  ;;  %v1030_v52 = vunpack.i.l.bf16 %v1029_v50 }
 0x13b   :  { %509 = vmatpush.msrb.mxu3 %v1030_v52  ;;  %536 = vmatpush.msra.mxu0 %v1031_v51 }
 0x143   :  { %801 = vrot.lane.b32.xlu0 %v1408_v30, %s1281_s15 }
 0x14b   :  { %671 = vrot.lane.b32.xlu0 %v1414_v32, %s1279_s13 }
 0x19e   :  { %v438_v53 = vpop.f32.mrf.mxu1 }
 0x19f   :  { %v469_v54 = vsel %vm266_vm1, %v438_v53, -inf }
 0x1a0   :  { %470 = vmax.xlane.f32.xlu1 %v469_v54 }
 0x1a2   :  { %v321_v55 = vpop.xlane.xlu0 %320 }
 0x1a3   :  { %v325_v56 = vsub.f32 %v290_v43, %v321_v55 }
 0x1a5   :  { %v327_v57 = vmul.f32 1.442695, %v325_v56 }
 0x1a6   :  { %v596_v58 = vpop.f32.mrf.mxu1 }
 0x1a7   :  { %1036 = vpow2.f32 %v327_v57  ;;  %v466_v59 = vpop.f32.mrf.mxu2  ;;  %v627_v60 = vsel %vm266_vm1, %v596_v58, -inf }
 0x1a8   :  { %628 = vmax.xlane.f32.xlu2 %v627_v60  ;;  %v472_v61 = vsel %vm266_vm1, %v466_v59, -inf }
 0x1a9   :  { %473 = vmax.xlane.f32.xlu1 %v472_v61 }
 0x1aa   :  { %v324_v62 = vpop.xlane.xlu2 %323 }
 0x1ab   :  { %v326_v63 = vsub.f32 %v316_v48, %v324_v62 }
 0x1ad   :  { %v1443_v0 = vpop.eup %1036  ;;  %v329_v1 = vmul.f32 1.442695, %v326_v63 }
 0x1ae   :  { %986 = vmatmul.msk.f32.vlgmr.msra.gmra.mxu3 %vm266_vm1, %v1443_v0  ;;  %v752_v2 = vpop.f32.mrf.mxu1  ;;  %v331_v42 = vsel %vm266_vm1, %v1443_v0, 0.0 }
 0x1af   :  { %1038 = vpow2.f32 %v329_v1  ;;  %v783_v3 = vsel %vm266_vm1, %v752_v2, -inf  ;;  %v624_v4 = vpop.f32.mrf.mxu2 }
 0x1b0   :  { %784 = vmax.xlane.f32.xlu2 %v783_v3  ;;  %v630_v6 = vsel %vm266_vm1, %v624_v4, -inf }
 0x1b5   :  { %v1448_v5 = vpop.eup %1038  ;;  %v802_v7 = vpop.permute.xlu0 %801 }
 0x1b6   :  { %987 = vmatmul.msk.f32.vlgmr.msrb.gmra.mxu0 %vm266_vm1, %v1448_v5  ;;  %v334_v44 = vsel %vm266_vm1, %v1448_v5, 0.0 }
 0x1b7   :  { %v780_v8 = vpop.f32.mrf.mxu2 }
 0x1b8   :  { %631 = vmax.xlane.f32.xlu2 %v630_v6  ;;  %v786_v9 = vsel %vm266_vm1, %v780_v8, -inf }
 0x1bd   :  { %v672_v10 = vpop.permute.xlu0 %671 }
 0x1be   :  { %692 = vmatpush.msrb.mxu0 %v672_v10 }
 0x1c0   :  { %787 = vmax.xlane.f32.xlu2 %v786_v9 }
 0x1c2   :  { %645 = vrot.lane.b32.xlu1 %v1408_v30, %s1279_s13 }
 0x1d8   :  { %827 = vrot.lane.b32.xlu2 %v1414_v32, %s1281_s15 }
 0x213   :  { %v471_v11 = vpop.xlane.xlu1 %470 }
 0x214   :  { %v475_v12 = vsub.f32 %v438_v53, %v471_v11 }
 0x216   :  { %v477_v13 = vmul.f32 1.442695, %v475_v12 }
 0x218   :  { %1040 = vpow2.f32 %v477_v13 }
 0x21b   :  { %v629_v14 = vpop.xlane.xlu2 %628 }
 0x21c   :  { %v633_v15 = vsub.f32 %v596_v58, %v629_v14  ;;  %v474_v16 = vpop.xlane.xlu1 %473 }
 0x21d   :  { %v476_v17 = vsub.f32 %v466_v59, %v474_v16 }
 0x21e   :  { %v1041_v18 = vpop.eup %1040  ;;  %v635_v19 = vmul.f32 1.442695, %v633_v15 }
 0x21f   :  { %v479_v20 = vmul.f32 1.442695, %v476_v17  ;;  %992 = vmatmul.msk.f32.vlgmr.msrb.gmra.mxu3 %vm266_vm1, %v1041_v18  ;;  %v481_v21 = vsel %vm266_vm1, %v1041_v18, 0.0 }
 0x220   :  { %1042 = vpow2.f32 %v635_v19  ;;  %482 = vadd.xlane.f32.xlu1 %v481_v21 }
 0x221   :  { %1044 = vpow2.f32 %v479_v20 }
 0x223   :  { %v785_v22 = vpop.xlane.xlu2 %784 }
 0x224   :  { %v789_v23 = vsub.f32 %v752_v2, %v785_v22 }
 0x226   :  { %v1043_v24 = vpop.eup %1042  ;;  %v791_v25 = vmul.f32 1.442695, %v789_v23 }
 0x227   :  { %v1045_v26 = vpop.eup %1044  ;;  %v639_v27 = vsel %vm266_vm1, %v1043_v24, 0.0 }
 0x228   :  { %1046 = vpow2.f32 %v791_v25  ;;  %993 = vmatmul.msk.f32.vlgmr.msra.gmra.mxu0 %vm266_vm1, %v1045_v26  ;;  %640 = vadd.xlane.f32.xlu0 %v639_v27  ;;  %v484_v28 = vsel %vm266_vm1, %v1045_v26, 0.0 }
 0x229   :  { %485 = vadd.xlane.f32.xlu1 %v484_v28 }
 0x22b   :  { %v632_v29 = vpop.xlane.xlu2 %631 }
 0x22c   :  { %v634_v30 = vsub.f32 %v624_v4, %v632_v29 }
 0x22e   :  { %v1047_v31 = vpop.eup %1046  ;;  %v637_v32 = vmul.f32 1.442695, %v634_v30 }
 0x22f   :  { %v795_v33 = vsel %vm266_vm1, %v1047_v31, 0.0 }
 0x230   :  { %1048 = vpow2.f32 %v637_v32  ;;  %796 = vadd.xlane.f32.xlu2 %v795_v33 }
 0x231   :  { %v1476_v49 = vpop.f32.mrf.mxu3 }
 0x233   :  { %v788_v34 = vpop.xlane.xlu2 %787  ;;  %v1481_v0 = vpop.f32.mrf.mxu0 }
 0x234   :  { %v790_v35 = vsub.f32 %v780_v8, %v788_v34  ;;  %v646_v36 = vpop.permute.xlu1 %645 }
 0x235   :  { %666 = vmatpush.msra.mxu3 %v646_v36 }
 0x236   :  { %v1049_v37 = vpop.eup %1048  ;;  %v793_v38 = vmul.f32 1.442695, %v790_v35  ;;  %998 = vmatmul.msk.f32.vlgmr.msra.gmra.mxu3 %vm266_vm1, %v1043_v24 }
 0x237   :  { %822 = vmatpush.msrb.mxu3 %v802_v7  ;;  %999 = vmatmul.msk.f32.vlgmr.msrb.gmra.mxu0 %vm266_vm1, %v1049_v37  ;;  %v642_v39 = vsel %vm266_vm1, %v1049_v37, 0.0 }
 0x238   :  { %1050 = vpow2.f32 %v793_v38  ;;  %643 = vadd.xlane.f32.xlu0 %v642_v39 }
 0x23b   :  { %v828_v40 = vpop.permute.xlu2 %827 }
 0x23c   :  { %848 = vmatpush.msra.mxu0 %v828_v40 }
 0x23e   :  { %v1051_v41 = vpop.eup %1050  ;;  %1004 = vmatmul.msk.f32.vlgmr.msrb.gmra.mxu3 %vm266_vm1, %v1047_v31 }
 0x23f   :  { %1005 = vmatmul.msk.f32.vlgmr.msra.gmra.mxu0 %vm266_vm1, %v1051_v41  ;;  %v798_v43 = vsel %vm266_vm1, %v1051_v41, 0.0 }
 0x240   :  { %332 = vadd.xlane.f32.xlu0 %v331_v42  ;;  %799 = vadd.xlane.f32.xlu1 %v798_v43 }
 0x248   :  { %335 = vadd.xlane.f32.xlu1 %v334_v44 }
 0x293   :  { %v483_v45 = vpop.xlane.xlu1 %482 }
 0x294   :  { %1052 = vrcp.f32 %v483_v45  ;;  %v552_v52 = vand.u32 2147483648, %v483_v45  ;;  %v550_v54 = vand.u32 2147483647, %v483_v45  ;;  %vm546_vm3 = vweird.f32 %v483_v45 }
 0x296   :  { %v553_v57 = vor.u32 1.1754944e-38, %v552_v52  ;;  %vm551_vm5 = vcmp.eq.f32.partialorder %v550_v54, 8.507059e+37 }
 0x29a   :  { %v1053_v46 = vpop.eup %1052 }
 0x29b   :  { %v542_v47 = vmul.f32 %v1053_v46, %v483_v45  ;;  %v1474_v48 = vpop.xlane.xlu0 %640  ;;  %vm547_vm2 = vweird.f32 %v1053_v46 }
 0x29c   :  { %1054 = vrcp.f32 %v1474_v48  ;;  %v486_v50 = vpop.xlane.xlu1 %485  ;;  %vm548_vm4 = vmor %vm546_vm3, %vm547_vm2  ;;  %v708_v23 = vand.u32 2147483648, %v1474_v48  ;;  %vm702_vm11 = vweird.f32 %v1474_v48  ;;  %v706_v24 = vand.u32 2147483647, %v1474_v48 }
 0x29d   :  { %v543_v51 = vsub.f32 1.0, %v542_v47  ;;  %1056 = vrcp.f32 %v486_v50  ;;  %v566_v4 = vand.u32 2147483648, %v486_v50  ;;  %v564_v6 = vand.u32 2147483647, %v486_v50 }
 0x29e   :  { %vm560_vm7 = vweird.f32 %v486_v50  ;;  %v709_v29 = vor.u32 1.1754944e-38, %v708_v23  ;;  %vm707_vm14 = vcmp.eq.f32.partialorder %v706_v24, 8.507059e+37 }
 0x29f   :  { %v544_v53 = vmul.f32 %v1053_v46, %v543_v51  ;;  %v567_v10 = vor.u32 1.1754944e-38, %v566_v4  ;;  %vm565_vm9 = vcmp.eq.f32.partialorder %v564_v6, 8.507059e+37  ;;  %v915_v4 = vld [vmem:[#allocation13] sm:$0xff] }
 0x2a1   :  { %v545_v55 = vadd.f32 %v1053_v46, %v544_v53 }
 0x2a2   :  { %v1055_v56 = vpop.eup %1054  ;;  %v511_v62 = vpop.f32.mrf.mxu3 }
 0x2a3   :  { %v1057_v58 = vpop.eup %1056  ;;  %v549_v59 = vsel %vm548_vm4, %v1053_v46, %v545_v55  ;;  %v1479_v60 = vpop.xlane.xlu2 %796  ;;  %v698_v2 = vmul.f32 %v1055_v56, %v1474_v48  ;;  %vm703_vm10 = vweird.f32 %v1055_v56 }
 0x2a4   :  { %v556_v61 = vmul.f32 %v1057_v58, %v486_v50  ;;  %v554_v63 = vsel %vm551_vm5, %v553_v57, %v549_v59  ;;  %1058 = vrcp.f32 %v1479_v60  ;;  %vm561_vm6 = vweird.f32 %v1057_v58  ;;  %vm704_vm12 = vmor %vm702_vm11, %vm703_vm10 }
 0x2a5   :  { %v569_v1 = vmul.f32 %v554_v63, %v511_v62  ;;  %v699_v7 = vsub.f32 1.0, %v698_v2  ;;  %vm562_vm8 = vmor %vm560_vm7, %vm561_vm6  ;;  %v538_v13 = vpop.f32.mrf.mxu0  ;;  %v864_v39 = vand.u32 2147483648, %v1479_v60  ;;  %vm858_vm4 = vweird.f32 %v1479_v60  ;;  %v918_v62 = vld [vmem:[#allocation13 + $0x18] sm:$0xff]  ;;  %v917_v63 = vld [vmem:[#allocation13 + $0x10] sm:$0xff] }
 0x2a6   :  { %v557_v3 = vsub.f32 1.0, %v556_v61  ;;  %v862_v42 = vand.u32 2147483647, %v1479_v60  ;;  %941 = vmatpush.msra.mxu1 %v918_v62 }
 0x2a7   :  { %885 = vrot.lane.b32.xlu0 %v569_v1, %s1272_s26  ;;  %v700_v17 = vmul.f32 %v1055_v56, %v699_v7  ;;  %v865_v48 = vor.u32 1.1754944e-38, %v864_v39  ;;  %v916_v1 = vld [vmem:[#allocation13 + $0x8] sm:$0xff] }
 0x2a8   :  { %v558_v5 = vmul.f32 %v1057_v58, %v557_v3  ;;  %942 = vmatpush.msra.mxu1 %v917_v63 }
 0x2a9   :  { %v701_v20 = vadd.f32 %v1055_v56, %v700_v17 }
 0x2aa   :  { %v559_v8 = vadd.f32 %v1057_v58, %v558_v5  ;;  %v1486_v9 = vpop.eup %1058  ;;  %943 = vmatpush.msra.mxu1 %v916_v1 }
 0x2ab   :  { %v644_v11 = vpop.xlane.xlu0 %643  ;;  %v854_v15 = vmul.f32 %v1486_v9, %v1479_v60  ;;  %v705_v26 = vsel %vm704_vm12, %v1055_v56, %v701_v20  ;;  %vm859_vm15 = vweird.f32 %v1486_v9 }
 0x2ac   :  { %v563_v12 = vsel %vm562_vm8, %v1057_v58, %v559_v8  ;;  %1060 = vrcp.f32 %v644_v11  ;;  %v722_v31 = vand.u32 2147483648, %v644_v11  ;;  %v710_v33 = vsel %vm707_vm14, %v709_v29, %v705_v26  ;;  %vm860_vm5 = vmor %vm858_vm4, %vm859_vm15  ;;  %944 = vmatpush.msra.mxu1 %v915_v4 }
 0x2ad   :  { %v568_v14 = vsel %vm565_vm9, %v567_v10, %v563_v12  ;;  %v855_v19 = vsub.f32 1.0, %v854_v15  ;;  %vm716_vm2 = vweird.f32 %v644_v11  ;;  %v720_v34 = vand.u32 2147483647, %v644_v11 }
 0x2ae   :  { %v570_v16 = vmul.f32 %v568_v14, %v538_v13  ;;  %v723_v43 = vor.u32 1.1754944e-38, %v722_v31  ;;  %vm863_vm8 = vcmp.eq.f32.partialorder %v862_v42, 8.507059e+37 }
 0x2af   :  { %v856_v27 = vmul.f32 %v1486_v9, %v855_v19  ;;  %vm721_vm6 = vcmp.eq.f32.partialorder %v720_v34, 8.507059e+37 }
 0x2b0   :  { %887 = vrot.lane.b32.xlu0 %v570_v16, %s1272_s26 }
 0x2b1   :  { %v857_v36 = vadd.f32 %v1486_v9, %v856_v27 }
 0x2b2   :  { %v1061_v18 = vpop.eup %1060 }
 0x2b3   :  { %v712_v21 = vmul.f32 %v1061_v18, %v644_v11  ;;  %v800_v22 = vpop.xlane.xlu1 %799  ;;  %vm717_vm13 = vweird.f32 %v1061_v18  ;;  %v861_v45 = vsel %vm860_vm5, %v1486_v9, %v857_v36  ;;  %v333_v2 = vpop.xlane.xlu0 %332  ;;  %vm909_vm5 = vcmask 130048  }
 0x2b4   :  { %1062 = vrcp.f32 %v800_v22  ;;  %v694_v38 = vpop.f32.mrf.mxu0  ;;  %vm718_vm3 = vmor %vm716_vm2, %vm717_vm13  ;;  %v878_v47 = vand.u32 2147483648, %v800_v22  ;;  %v876_v51 = vand.u32 2147483647, %v800_v22  ;;  %v866_v53 = vsel %vm863_vm8, %v865_v48, %v861_v45 }
 0x2b5   :  { %v713_v25 = vsub.f32 1.0, %v712_v21  ;;  %vm872_vm9 = vweird.f32 %v800_v22  ;;  %1064 = vrcp.f32 %v333_v2  ;;  %v394_v13 = vand.u32 2147483648, %v333_v2 }
 0x2b6   :  { %v879_v57 = vor.u32 1.1754944e-38, %v878_v47  ;;  %vm877_vm11 = vcmp.eq.f32.partialorder %v876_v51, 8.507059e+37  ;;  %vm388_vm13 = vweird.f32 %v333_v2  ;;  %v392_v14 = vand.u32 2147483647, %v333_v2 }
 0x2b7   :  { %v714_v28 = vmul.f32 %v1061_v18, %v713_v25 }
 0x2b8   :  { %vm393_vm15 = vcmp.eq.f32.partialorder %v392_v14, 8.507059e+37 }
 0x2b9   :  { %v715_v30 = vadd.f32 %v1061_v18, %v714_v28  ;;  %v668_v32 = vpop.f32.mrf.mxu3 }
 0x2ba   :  { %v725_v35 = vmul.f32 %v710_v33, %v668_v32  ;;  %v1063_v37 = vpop.eup %1062 }
 0x2bb   :  { %v868_v40 = vmul.f32 %v1063_v37, %v800_v22  ;;  %v719_v41 = vsel %vm718_vm3, %v1061_v18, %v715_v30  ;;  %vm873_vm7 = vweird.f32 %v1063_v37  ;;  %v336_v3 = vpop.xlane.xlu1 %335  ;;  %v1065_v5 = vpop.eup %1064  ;;  %v395_v18 = vor.u32 1.1754944e-38, %v394_v13 }
 0x2bc   :  { %893 = vrot.lane.b32.xlu2 %v725_v35, %s1282_s8  ;;  %v724_v46 = vsel %vm721_vm6, %v723_v43, %v719_v41  ;;  %vm874_vm10 = vmor %vm872_vm9, %vm873_vm7  ;;  %v850_v59 = vpop.f32.mrf.mxu0  ;;  %1066 = vrcp.f32 %v336_v3  ;;  %v384_v6 = vmul.f32 %v1065_v5, %v333_v2  ;;  %vm389_vm12 = vweird.f32 %v1065_v5 }
 0x2bd   :  { %v869_v44 = vsub.f32 1.0, %v868_v40  ;;  %v726_v54 = vmul.f32 %v724_v46, %v694_v38  ;;  %vm390_vm14 = vmor %vm388_vm13, %vm389_vm12  ;;  %v408_v21 = vand.u32 2147483648, %v336_v3  ;;  %vm402_vm3 = vweird.f32 %v336_v3  ;;  %v1035_v38 = vld [vmem:[%s1530_s10] ss:$0 sm:$0xff] }
 0x2be   :  { %v385_v7 = vsub.f32 1.0, %v384_v6  ;;  %v406_v22 = vand.u32 2147483647, %v336_v3  ;;  %vm912_vm6 = vcmask 195584  }
 0x2bf   :  { %v870_v50 = vmul.f32 %v1063_v37, %v869_v44  ;;  %v409_v27 = vor.u32 1.1754944e-38, %v408_v21 }
 0x2c0   :  { %v386_v9 = vmul.f32 %v1065_v5, %v385_v7  ;;  %vm407_vm7 = vcmp.eq.f32.partialorder %v406_v22, 8.507059e+37 }
 0x2c1   :  { %v824_v52 = vpop.f32.mrf.mxu3  ;;  %v871_v55 = vadd.f32 %v1063_v37, %v870_v50 }
 0x2c2   :  { %v881_v56 = vmul.f32 %v866_v53, %v824_v52  ;;  %v1067_v8 = vpop.eup %1066  ;;  %v387_v11 = vadd.f32 %v1065_v5, %v386_v9 }
 0x2c3   :  { %v875_v58 = vsel %vm874_vm10, %v1063_v37, %v871_v55  ;;  %v398_v10 = vmul.f32 %v1067_v8, %v336_v3  ;;  %vm403_vm2 = vweird.f32 %v1067_v8 }
 0x2c4   :  { %895 = vrot.lane.b32.xlu2 %v726_v54, %s1282_s8  ;;  %901 = vrot.lane.b32.xlu1 %v881_v56, %s1283_s16  ;;  %v880_v60 = vsel %vm877_vm11, %v879_v57, %v875_v58  ;;  %v391_v17 = vsel %vm390_vm14, %v1065_v5, %v387_v11  ;;  %vm404_vm4 = vmor %vm402_vm3, %vm403_vm2 }
 0x2c5   :  { %v882_v61 = vmul.f32 %v880_v60, %v850_v59  ;;  %v399_v12 = vsub.f32 1.0, %v398_v10  ;;  %v396_v19 = vsel %vm393_vm15, %v395_v18, %v391_v17 }
 0x2c6   :  { %v411_v23 = vmul.f32 %v396_v19, %v1476_v49 }
 0x2c7   :  { %903 = vrot.lane.b32.xlu0 %v882_v61, %s1283_s16  ;;  %v400_v16 = vmul.f32 %v1067_v8, %v399_v12 }
 0x2c9   :  { %v401_v20 = vadd.f32 %v1067_v8, %v400_v16 }
 0x2cb   :  { %v405_v26 = vsel %vm404_vm4, %v1067_v8, %v401_v20 }
 0x2cc   :  { %v410_v29 = vsel %vm407_vm7, %v409_v27, %v405_v26 }
 0x2cd   :  { %v412_v33 = vmul.f32 %v410_v29, %v1481_v0 }
 0x316   :  { %v894_v24 = vpop.permute.xlu2 %893 }
 0x319   :  { %v886_v15 = vpop.permute.xlu0 %885 }
 0x31a   :  { %v907_v25 = vsel %vm266_vm1, %v411_v23, %v886_v15 }
 0x31b   :  { %v910_v31 = vsel %vm909_vm5, %v907_v25, %v894_v24 }
 0x31e   :  { %v896_v35 = vpop.permute.xlu2 %895 }
 0x322   :  { %v888_v28 = vpop.permute.xlu0 %887 }
 0x323   :  { %v908_v49 = vsel %vm266_vm1, %v412_v33, %v888_v28 }
 0x324   :  { %v911_v36 = vsel %vm909_vm5, %v908_v49, %v896_v35 }
 0x336   :  { %v902_v30 = vpop.permute.xlu1 %901 }
 0x337   :  { %v913_v32 = vsel %vm912_vm6, %v910_v31, %v902_v30 }
 0x338   :  { %1006 = vmatmul.msk.f32.vlgmr.msra.gmra.mxu1 %vm162_vm0, %v913_v32 }
 0x339   :  { %v904_v34 = vpop.permute.xlu0 %903 }
 0x33a   :  { %v914_v37 = vsel %vm912_vm6, %v911_v36, %v904_v34 }
 0x340   :  { %1007 = vmatmul.msk.f32.gmra.mxu1 %vm162_vm0, %v914_v37 }
 0x3b5   :  { %v946_v39 = vpop.f32.mrf.mxu1 }
 0x3b6   :  { %v947_v40 = vadd.f32 %v1035_v38, %v946_v39 }
 0x3b8   :  { %952 = vst.msk [vmem:[#allocation14] sm:$0xff] %vm162_vm0, %v947_v40 }
 0x3bd   :  { %v949_v0 = vpop.f32.mrf.mxu1 }
 0x3be   :  { %v950_v41 = vadd.f32 %v1035_v38, %v949_v0 }
 0x3c0   :  { %953 = vst.msk [vmem:[#allocation14 + $0x8] sm:$0xff] %vm162_vm0, %v950_v41 }
 0x3c1   :  { %966 = dma.vmem_to_hbm [thread:$0]  %s959_s19, 256, %s961_s21, [#allocation4], %s1271_s25, %s1271_s25, %s1272_s26  }
 0x3c2   :  { %1268 = dma.done.wait [#allocation4], 256  }
 0x3c3   :  { %1269 = vsyncadd [#allocation4], 4294967040 }
 0x3c4   :  { %971 = vsyncpa [#allocation3], 1 }
 0x3c5   :  { %972 = vsyncpa [#allocation6], 1 }
 0x3c6   :  { %973 = vsyncpa [#allocation9], 1 }
 0x3c7   :  { %974 = vsyncpa [#allocation12], 1 }
 0x3c8   :  { %975 = vsyncpa [#allocation4], 1 }

</bundles_post_ra>
